<compile_context>
chip_gen: v5e
topology: v5e:2x2
jax: 0.10.0
libtpu: 0.0.40
codegen_flags: <defaults>
</compile_context>

<pallas_src>
import jax
import jax.numpy as jnp
from jax.experimental import pallas as pl
from jax.experimental.pallas import tpu as pltpu


def _round_up(x, m):
    return ((x + m - 1) // m) * m


def _pick_tile(total, cap):
    """Largest multiple of 128 that divides `total` (itself a multiple of 128)
    and is <= cap."""
    best = 128
    t = 256
    while t <= min(total, cap):
        if total % t == 0:
            best = t
        t += 128
    return best


# ----------------------------------------------------------------------------
# Fused kernel factory.
#   grid step i <  ng : LSTM gate update for hidden lane-tile i
#   grid step i >= ng : output-projection vocab tile (i - ng)
# ----------------------------------------------------------------------------
def _make_decoder_kernel(ng, th):
    def kernel(x_ref, c0_ref, wg_ref, bg_ref, wo_ref, ws_ref, bo_ref,
               h_ref, c_ref, pred_ref, h_bf16):
        i = pl.program_id(0)

        @pl.when(i < ng)
        def _gate_phase():
            x = x_ref[...]                                     # (Bp, Kp) bf16

            def gate(g):                                       # (Bp, TH) f32
                return (jnp.dot(x, wg_ref[g],
                                preferred_element_type=jnp.float32)
                        + bg_ref[g])

            # PyTorch gate order: input, forget, cell(g), output.
            i_g = jax.nn.sigmoid(gate(0))
            f_g = jax.nn.sigmoid(gate(1))
            g_g = jnp.tanh(gate(2))
            o_g = jax.nn.sigmoid(gate(3))

            c_new = f_g * c0_ref[...] + i_g * g_g
            h_new = o_g * jnp.tanh(c_new)

            h_ref[...] = h_new
            c_ref[...] = c_new
            # Stash bf16 h tile in VMEM scratch for the projection phase.
            off = pl.multiple_of(i * th, th)
            h_bf16[:, pl.ds(off, th)] = h_new.astype(jnp.bfloat16)

        @pl.when(i >= ng)
        def _proj_phase():
            w = wo_ref[...]
            if w.dtype != jnp.bfloat16:
                # int8 weight-only dequant (scale applied after accumulation).
                w = w.astype(jnp.float32).astype(jnp.bfloat16)
            acc = jnp.dot(h_bf16[...], w, preferred_element_type=jnp.float32)
            pred_ref[...] = acc * ws_ref[...] + bo_ref[...]

    return kernel


# ----------------------------------------------------------------------------
# Parameter prep: PyTorch-layout weights -> fused / padded / gate-major layout.
# ----------------------------------------------------------------------------
def prepare_params(raw, embedding_dim, hidden_dim, vocab_size, *,
                   quantize_w_out=True):
    E, H, V = embedding_dim, hidden_dim, vocab_size
    Hp = _round_up(H, 128)
    Vp = _round_up(V, 128)
    K = E + 2 * H                      # [embedded(E) | context(H) | h_prev(H)]
    Kp = _round_up(K, 128)

    # Fuse [W_ih ; W_hh], transpose to (in_features, 4H) (kernel does x @ W),
    # then re-lay gate-major: (4, Kp, Hp).
    w_ih_t = raw["weight_ih_l0"].T                            # (E+H, 4H)
    w_hh_t = raw["weight_hh_l0"].T                            # (H,   4H)
    w_fused = jnp.concatenate([w_ih_t, w_hh_t], axis=0)       # (K, 4H)
    w4 = w_fused.reshape(K, 4, H).transpose(1, 0, 2)          # (4, K, H)
    w_gates = (jnp.zeros((4, Kp, Hp), jnp.float32)
               .at[:, :K, :H].set(w4).astype(jnp.bfloat16))

    b_fused = raw["bias_ih_l0"] + raw["bias_hh_l0"]           # (4H,)
    b_gates = (jnp.zeros((4, 1, Hp), jnp.float32)
               .at[:, 0, :H].set(b_fused.reshape(4, H)))

    # Output projection; padded rows/cols are zero so padded lanes stay zero.
    w_out_f32 = (jnp.zeros((Hp, Vp), jnp.float32)
                 .at[:H, :V].set(raw["out_weight"].T))
    b_out = jnp.zeros((1, Vp), jnp.float32).at[0, :V].set(raw["out_bias"])

    if quantize_w_out:
        # Weight-only int8, per-vocab-column symmetric scales.
        absmax = jnp.max(jnp.abs(w_out_f32), axis=0, keepdims=True)    # (1,Vp)
        w_out_scale = jnp.where(absmax > 0.0, absmax / 127.0, 1.0)
        q = jnp.clip(jnp.round(w_out_f32 / w_out_scale), -127.0, 127.0)
        w_out = q.astype(jnp.int8)
    else:
        w_out = w_out_f32.astype(jnp.bfloat16)
        w_out_scale = jnp.ones((1, Vp), jnp.float32)

    return {
        "emb": raw["embedding"].astype(jnp.bfloat16),          # (V, E)
        "w_gates": w_gates,                                    # (4, Kp, Hp) bf16
        "b_gates": b_gates,                                    # (4, 1, Hp)  f32
        "w_out": w_out,                                        # (Hp, Vp) int8|bf16
        "w_out_scale": w_out_scale,                            # (1, Vp)  f32
        "b_out": b_out,                                        # (1, Vp)  f32
        "dims": (E, H, V, Hp, Vp, K, Kp),                      # static ints
    }


# ----------------------------------------------------------------------------
# Forward pass mirroring Decoder.forward (seq_len == 1).
# ----------------------------------------------------------------------------
def decoder_forward(params, input_word, context, hidden_state):
    E, H, V, Hp, Vp, K, Kp = params["dims"]
    B = input_word.shape[0]
    Bp = max(16, _round_up(B, 16))     # bf16 vregs are [16,128]

    # Glue: embedding lookup + concat (== unsqueeze(1) + cat(dim=2) for T==1).
    embedded = jnp.take(params["emb"], input_word, axis=0)            # (B, E)
    context2d = context[:, 0, :] if context.ndim == 3 else context    # (B, H)
    h0 = hidden_state[0][0]                                           # (B, H)
    c0 = hidden_state[1][0]                                           # (B, H)

    # NOTE: h_prev / context are fed to the MXU in bf16 (cell state stays f32);
    # matches PyTorch f32 only within mixed-precision tolerance.
    x = jnp.concatenate(
        [embedded,
         context2d.astype(jnp.bfloat16),
         h0.astype(jnp.bfloat16)], axis=-1)                           # (B, K)
    x_pad = jnp.zeros((Bp, Kp), jnp.bfloat16).at[:B, :K].set(x)
    c0_pad = jnp.zeros((Bp, Hp), jnp.float32).at[:B, :H].set(
        c0.astype(jnp.float32))

    TH = _pick_tile(Hp, 256)       # hidden lane tile (gate phase)
    TV = _pick_tile(Vp, 2048)      # vocab tile (projection phase)
    NG = Hp // TH
    NV = Vp // TV

    w_out = params["w_out"]
    cost = pl.CostEstimate(
        flops=2 * Bp * Kp * 4 * Hp + 2 * Bp * Hp * Vp,
        transcendentals=6 * Bp * Hp,
        bytes_accessed=(x_pad.size * 2 + c0_pad.size * 4
                        + params["w_gates"].size * 2
                        + params["b_gates"].size * 4
                        + w_out.size * w_out.dtype.itemsize
                        + params["w_out_scale"].size * 4
                        + params["b_out"].size * 4
                        + 2 * Bp * Hp * 4 + Bp * Vp * 4))

    h_new, c_new, pred = pl.pallas_call(
        _make_decoder_kernel(NG, TH),
        out_shape=(jax.ShapeDtypeStruct((Bp, Hp), jnp.float32),
                   jax.ShapeDtypeStruct((Bp, Hp), jnp.float32),
                   jax.ShapeDtypeStruct((Bp, Vp), jnp.float32)),
        grid=(NG + NV,),
        in_specs=[
            # x: resident across the whole grid (constant block index).
            pl.BlockSpec((Bp, Kp), lambda i: (0, 0)),
            # c0 / gate weights / gate bias: one lane tile per gate step;
            # index clamps during the projection phase (no re-DMA once clamped).
            pl.BlockSpec((Bp, TH), lambda i: (0, jnp.minimum(i, NG - 1))),
            pl.BlockSpec((4, Kp, TH), lambda i: (0, 0, jnp.minimum(i, NG - 1))),
            pl.BlockSpec((4, 1, TH), lambda i: (0, 0, jnp.minimum(i, NG - 1))),
            # w_out / scale / bias: vocab tile (i - NG) during projection; the
            # first tile prefetches while the gate phase computes.
            pl.BlockSpec((Hp, TV), lambda i: (0, jnp.maximum(i - NG, 0))),
            pl.BlockSpec((1, TV), lambda i: (0, jnp.maximum(i - NG, 0))),
            pl.BlockSpec((1, TV), lambda i: (0, jnp.maximum(i - NG, 0))),
        ],
        out_specs=(
            pl.BlockSpec((Bp, TH), lambda i: (0, jnp.minimum(i, NG - 1))),
            pl.BlockSpec((Bp, TH), lambda i: (0, jnp.minimum(i, NG - 1))),
            pl.BlockSpec((Bp, TV), lambda i: (0, jnp.maximum(i - NG, 0))),
        ),
        scratch_shapes=[pltpu.VMEM((Bp, Hp), jnp.bfloat16)],
        cost_estimate=cost,
        compiler_params=pltpu.CompilerParams(
            # Projection tiles depend on the gate-phase scratch -> arbitrary.
            dimension_semantics=("arbitrary",),
            # Keep live tiles <= ~32 MiB so this also fits v7x's 64 MiB VMEM.
            vmem_limit_bytes=32 * 1024 * 1024),
    )(x_pad, c0_pad, params["w_gates"], params["b_gates"],
      w_out, params["w_out_scale"], params["b_out"])

    # Slice off padding and restore PyTorch shapes.
    prediction = pred[:B, :V][:, None, :]        # (B, 1, V)
    hidden = h_new[:B, :H][None, :, :]           # (1, B, H)
    cell = c_new[:B, :H][None, :, :]             # (1, B, H)
    return prediction, (hidden, cell)


# ----------------------------------------------------------------------------
# PyTorch-layout random init (same shapes nn.Embedding / nn.LSTM / nn.Linear use)
# ----------------------------------------------------------------------------
def init_torch_like_params(key, vocab_size, embedding_dim, hidden_dim):
    E, H, V = embedding_dim, hidden_dim, vocab_size
    ks = jax.random.split(key, 7)
    scale = 0.1
    return {
        "embedding":    scale * jax.random.normal(ks[0], (V, E), jnp.float32),
        "weight_ih_l0": scale * jax.random.normal(ks[1], (4 * H, E + H), jnp.float32),
        "weight_hh_l0": scale * jax.random.normal(ks[2], (4 * H, H), jnp.float32),
        "bias_ih_l0":   scale * jax.random.normal(ks[3], (4 * H,), jnp.float32),
        "bias_hh_l0":   scale * jax.random.normal(ks[4], (4 * H,), jnp.float32),
        "out_weight":   scale * jax.random.normal(ks[5], (V, H), jnp.float32),
        "out_bias":     scale * jax.random.normal(ks[6], (V,), jnp.float32),
    }


if __name__ == "__main__":
    vocab_size, embedding_dim, hidden_dim = 32, 16, 32
    batch = 4

    key = jax.random.PRNGKey(0)
    k_par, k_tok, k_ctx, k_h, k_c = jax.random.split(key, 5)

    raw = init_torch_like_params(k_par, vocab_size, embedding_dim, hidden_dim)
    params = prepare_params(raw, embedding_dim, hidden_dim, vocab_size,
                            quantize_w_out=True)

    input_word = jax.random.randint(k_tok, (batch,), 0, vocab_size, jnp.int32)
    context = jax.random.normal(k_ctx, (batch, hidden_dim), jnp.float32)
    h0 = jax.random.normal(k_h, (1, batch, hidden_dim), jnp.float32)
    c0 = jax.random.normal(k_c, (1, batch, hidden_dim), jnp.float32)

    prediction, (hidden, cell) = decoder_forward(
        params, input_word, context, (h0, c0))
    jax.block_until_ready((prediction, hidden, cell))

    assert prediction.shape == (batch, 1, vocab_size)
    assert hidden.shape == (1, batch, hidden_dim)
    assert cell.shape == (1, batch, hidden_dim)
    assert bool(jnp.all(jnp.isfinite(prediction)))
    assert bool(jnp.all(jnp.isfinite(hidden)))
    assert bool(jnp.all(jnp.isfinite(cell)))

    print("KERNEL_OK")
</pallas_src>

<mosaic_0001>
module attributes {stable_mosaic.version = 11 : i64} {
  func.func @kernel(%arg0: i32, %arg1: memref<16x128xbf16, #tpu.memory_space<vmem>>, %arg2: memref<16x128xf32, #tpu.memory_space<vmem>>, %arg3: memref<4x128x128xbf16, #tpu.memory_space<vmem>>, %arg4: memref<4x1x128xf32, #tpu.memory_space<vmem>>, %arg5: memref<128x128xi8, #tpu.memory_space<vmem>>, %arg6: memref<1x128xf32, #tpu.memory_space<vmem>>, %arg7: memref<1x128xf32, #tpu.memory_space<vmem>>, %arg8: memref<16x128xf32, #tpu.memory_space<vmem>>, %arg9: memref<16x128xf32, #tpu.memory_space<vmem>>, %arg10: memref<16x128xf32, #tpu.memory_space<vmem>>, %arg11: memref<16x128xbf16, #tpu.memory_space<vmem>>) attributes {dimension_semantics = [#tpu.dimension_semantics<arbitrary>], iteration_bounds = array<i64: 2>, scalar_prefetch = 0 : i64, scratch_operands = 1 : i64, tpu.core_type = #tpu.core_type<tc>, window_params = [{pipeline_mode = #tpu.pipeline_mode<synchronous>, transform_indices = @transform_0, window_bounds = array<i64: 16, 128>}, {transform_indices = @transform_1, window_bounds = array<i64: 16, 128>}, {transform_indices = @transform_2, window_bounds = array<i64: 4, 128, 128>}, {transform_indices = @transform_3, window_bounds = array<i64: 4, 1, 128>}, {transform_indices = @transform_4, window_bounds = array<i64: 128, 128>}, {transform_indices = @transform_5, window_bounds = array<i64: 1, 128>}, {transform_indices = @transform_6, window_bounds = array<i64: 1, 128>}, {transform_indices = @transform_7, window_bounds = array<i64: 16, 128>}, {transform_indices = @transform_8, window_bounds = array<i64: 16, 128>}, {transform_indices = @transform_9, window_bounds = array<i64: 16, 128>}]} {
    %c1_i32 = arith.constant 1 : i32
    %0 = arith.cmpi slt, %arg0, %c1_i32 : i32
    %1 = arith.extui %0 : i1 to i32
    %c0_i32 = arith.constant 0 : i32
    %2 = arith.cmpi ne, %1, %c0_i32 : i32
    scf.if %2 {
      %c0 = arith.constant 0 : index
      %c0_2 = arith.constant 0 : index
      %6 = vector.load %arg1[%c0, %c0_2] : memref<16x128xbf16, #tpu.memory_space<vmem>>, vector<16x128xbf16>
      %c0_3 = arith.constant 0 : index
      %c0_4 = arith.constant 0 : index
      %c0_5 = arith.constant 0 : index
      %7 = vector.load %arg3[%c0_3, %c0_4, %c0_5] : memref<4x128x128xbf16, #tpu.memory_space<vmem>>, vector<1x128x128xbf16>
      %8 = vector.shape_cast %7 : vector<1x128x128xbf16> to vector<128x128xbf16>
      %cst = arith.constant dense<0.000000e+00> : vector<16x128xf32>
      %9 = tpu.matmul %6, %8, %cst {dimension_numbers = #tpu.dot_dimension_numbers<[1], [0], [0], [1], [0, 0, 1, 1], [], []>} : vector<16x128xbf16>, vector<128x128xbf16>, vector<16x128xf32> -> vector<16x128xf32>
      %c0_6 = arith.constant 0 : index
      %c0_7 = arith.constant 0 : index
      %c0_8 = arith.constant 0 : index
      %10 = vector.load %arg4[%c0_6, %c0_7, %c0_8] : memref<4x1x128xf32, #tpu.memory_space<vmem>>, vector<1x1x128xf32>
      %11 = vector.shape_cast %10 : vector<1x1x128xf32> to vector<1x128xf32>
      %12 = vector.broadcast %11 : vector<1x128xf32> to vector<16x128xf32>
      %13 = arith.addf %9, %12 : vector<16x128xf32>
      %14 = arith.negf %13 : vector<16x128xf32>
      %15 = math.exp %14 : vector<16x128xf32>
      %cst_9 = arith.constant 1.000000e+00 : f32
      %16 = vector.broadcast %cst_9 : f32 to vector<16x128xf32>
      %17 = arith.addf %16, %15 : vector<16x128xf32>
      %18 = arith.divf %16, %17 : vector<16x128xf32>
      %c1 = arith.constant 1 : index
      %c0_10 = arith.constant 0 : index
      %c0_11 = arith.constant 0 : index
      %19 = vector.load %arg3[%c1, %c0_10, %c0_11] : memref<4x128x128xbf16, #tpu.memory_space<vmem>>, vector<1x128x128xbf16>
      %20 = vector.shape_cast %19 : vector<1x128x128xbf16> to vector<128x128xbf16>
      %cst_12 = arith.constant dense<0.000000e+00> : vector<16x128xf32>
      %21 = tpu.matmul %6, %20, %cst_12 {dimension_numbers = #tpu.dot_dimension_numbers<[1], [0], [0], [1], [0, 0, 1, 1], [], []>} : vector<16x128xbf16>, vector<128x128xbf16>, vector<16x128xf32> -> vector<16x128xf32>
      %c1_13 = arith.constant 1 : index
      %c0_14 = arith.constant 0 : index
      %c0_15 = arith.constant 0 : index
      %22 = vector.load %arg4[%c1_13, %c0_14, %c0_15] : memref<4x1x128xf32, #tpu.memory_space<vmem>>, vector<1x1x128xf32>
      %23 = vector.shape_cast %22 : vector<1x1x128xf32> to vector<1x128xf32>
      %24 = vector.broadcast %23 : vector<1x128xf32> to vector<16x128xf32>
      %25 = arith.addf %21, %24 : vector<16x128xf32>
      %26 = arith.negf %25 : vector<16x128xf32>
      %27 = math.exp %26 : vector<16x128xf32>
      %cst_16 = arith.constant 1.000000e+00 : f32
      %28 = vector.broadcast %cst_16 : f32 to vector<16x128xf32>
      %29 = arith.addf %28, %27 : vector<16x128xf32>
      %30 = arith.divf %28, %29 : vector<16x128xf32>
      %c2 = arith.constant 2 : index
      %c0_17 = arith.constant 0 : index
      %c0_18 = arith.constant 0 : index
      %31 = vector.load %arg3[%c2, %c0_17, %c0_18] : memref<4x128x128xbf16, #tpu.memory_space<vmem>>, vector<1x128x128xbf16>
      %32 = vector.shape_cast %31 : vector<1x128x128xbf16> to vector<128x128xbf16>
      %cst_19 = arith.constant dense<0.000000e+00> : vector<16x128xf32>
      %33 = tpu.matmul %6, %32, %cst_19 {dimension_numbers = #tpu.dot_dimension_numbers<[1], [0], [0], [1], [0, 0, 1, 1], [], []>} : vector<16x128xbf16>, vector<128x128xbf16>, vector<16x128xf32> -> vector<16x128xf32>
      %c2_20 = arith.constant 2 : index
      %c0_21 = arith.constant 0 : index
      %c0_22 = arith.constant 0 : index
      %34 = vector.load %arg4[%c2_20, %c0_21, %c0_22] : memref<4x1x128xf32, #tpu.memory_space<vmem>>, vector<1x1x128xf32>
      %35 = vector.shape_cast %34 : vector<1x1x128xf32> to vector<1x128xf32>
      %36 = vector.broadcast %35 : vector<1x128xf32> to vector<16x128xf32>
      %37 = arith.addf %33, %36 : vector<16x128xf32>
      %38 = math.tanh %37 : vector<16x128xf32>
      %c3 = arith.constant 3 : index
      %c0_23 = arith.constant 0 : index
      %c0_24 = arith.constant 0 : index
      %39 = vector.load %arg3[%c3, %c0_23, %c0_24] : memref<4x128x128xbf16, #tpu.memory_space<vmem>>, vector<1x128x128xbf16>
      %40 = vector.shape_cast %39 : vector<1x128x128xbf16> to vector<128x128xbf16>
      %cst_25 = arith.constant dense<0.000000e+00> : vector<16x128xf32>
      %41 = tpu.matmul %6, %40, %cst_25 {dimension_numbers = #tpu.dot_dimension_numbers<[1], [0], [0], [1], [0, 0, 1, 1], [], []>} : vector<16x128xbf16>, vector<128x128xbf16>, vector<16x128xf32> -> vector<16x128xf32>
      %c3_26 = arith.constant 3 : index
      %c0_27 = arith.constant 0 : index
      %c0_28 = arith.constant 0 : index
      %42 = vector.load %arg4[%c3_26, %c0_27, %c0_28] : memref<4x1x128xf32, #tpu.memory_space<vmem>>, vector<1x1x128xf32>
      %43 = vector.shape_cast %42 : vector<1x1x128xf32> to vector<1x128xf32>
      %44 = vector.broadcast %43 : vector<1x128xf32> to vector<16x128xf32>
      %45 = arith.addf %41, %44 : vector<16x128xf32>
      %46 = arith.negf %45 : vector<16x128xf32>
      %47 = math.exp %46 : vector<16x128xf32>
      %cst_29 = arith.constant 1.000000e+00 : f32
      %48 = vector.broadcast %cst_29 : f32 to vector<16x128xf32>
      %49 = arith.addf %48, %47 : vector<16x128xf32>
      %50 = arith.divf %48, %49 : vector<16x128xf32>
      %c0_30 = arith.constant 0 : index
      %c0_31 = arith.constant 0 : index
      %51 = vector.load %arg2[%c0_30, %c0_31] : memref<16x128xf32, #tpu.memory_space<vmem>>, vector<16x128xf32>
      %52 = arith.mulf %30, %51 : vector<16x128xf32>
      %53 = arith.mulf %18, %38 : vector<16x128xf32>
      %54 = arith.addf %52, %53 : vector<16x128xf32>
      %55 = math.tanh %54 : vector<16x128xf32>
      %56 = arith.mulf %50, %55 : vector<16x128xf32>
      %c0_32 = arith.constant 0 : index
      %c0_33 = arith.constant 0 : index
      %57 = vector.load %arg8[%c0_32, %c0_33] : memref<16x128xf32, #tpu.memory_space<vmem>>, vector<16x128xf32>
      tpu.vector_store %arg8[%c0_32, %c0_33], %56 {strides = array<i32>} : memref<16x128xf32, #tpu.memory_space<vmem>>, vector<16x128xf32>,
      %c0_34 = arith.constant 0 : index
      %c0_35 = arith.constant 0 : index
      %58 = vector.load %arg9[%c0_34, %c0_35] : memref<16x128xf32, #tpu.memory_space<vmem>>, vector<16x128xf32>
      tpu.vector_store %arg9[%c0_34, %c0_35], %54 {strides = array<i32>} : memref<16x128xf32, #tpu.memory_space<vmem>>, vector<16x128xf32>,
      %c128_i32 = arith.constant 128 : i32
      %59 = arith.muli %arg0, %c128_i32 : i32
      %60 = tpu.assume_multiple %59, 128 : i32
      %61 = arith.truncf %56 : vector<16x128xf32> to vector<16x128xbf16>
      %c0_36 = arith.constant 0 : index
      %62 = arith.index_cast %60 : i32 to index
      %63 = vector.load %arg11[%c0_36, %62] : memref<16x128xbf16, #tpu.memory_space<vmem>>, vector<16x128xbf16>
      tpu.vector_store %arg11[%c0_36, %62], %61 {strides = array<i32>} : memref<16x128xbf16, #tpu.memory_space<vmem>>, vector<16x128xbf16>,
    } else {
    }
    %c1_i32_0 = arith.constant 1 : i32
    %3 = arith.cmpi sge, %arg0, %c1_i32_0 : i32
    %4 = arith.extui %3 : i1 to i32
    %c0_i32_1 = arith.constant 0 : i32
    %5 = arith.cmpi ne, %4, %c0_i32_1 : i32
    scf.if %5 {
      %c0 = arith.constant 0 : index
      %c0_2 = arith.constant 0 : index
      %6 = vector.load %arg5[%c0, %c0_2] : memref<128x128xi8, #tpu.memory_space<vmem>>, vector<128x128xi8>
      %7 = arith.sitofp %6 : vector<128x128xi8> to vector<128x128xf32>
      %8 = arith.truncf %7 : vector<128x128xf32> to vector<128x128xbf16>
      %c0_3 = arith.constant 0 : index
      %c0_4 = arith.constant 0 : index
      %9 = vector.load %arg11[%c0_3, %c0_4] : memref<16x128xbf16, #tpu.memory_space<vmem>>, vector<16x128xbf16>
      %cst = arith.constant dense<0.000000e+00> : vector<16x128xf32>
      %10 = tpu.matmul %9, %8, %cst {dimension_numbers = #tpu.dot_dimension_numbers<[1], [0], [0], [1], [0, 0, 1, 1], [], []>} : vector<16x128xbf16>, vector<128x128xbf16>, vector<16x128xf32> -> vector<16x128xf32>
      %c0_5 = arith.constant 0 : index
      %c0_6 = arith.constant 0 : index
      %11 = vector.load %arg6[%c0_5, %c0_6] : memref<1x128xf32, #tpu.memory_space<vmem>>, vector<1x128xf32>
      %12 = vector.broadcast %11 : vector<1x128xf32> to vector<16x128xf32>
      %13 = arith.mulf %10, %12 : vector<16x128xf32>
      %c0_7 = arith.constant 0 : index
      %c0_8 = arith.constant 0 : index
      %14 = vector.load %arg7[%c0_7, %c0_8] : memref<1x128xf32, #tpu.memory_space<vmem>>, vector<1x128xf32>
      %15 = vector.broadcast %14 : vector<1x128xf32> to vector<16x128xf32>
      %16 = arith.addf %13, %15 : vector<16x128xf32>
      %c0_9 = arith.constant 0 : index
      %c0_10 = arith.constant 0 : index
      %17 = vector.load %arg10[%c0_9, %c0_10] : memref<16x128xf32, #tpu.memory_space<vmem>>, vector<16x128xf32>
      tpu.vector_store %arg10[%c0_9, %c0_10], %16 {strides = array<i32>} : memref<16x128xf32, #tpu.memory_space<vmem>>, vector<16x128xf32>,
    } else {
    }
    return
  }
  func.func @transform_0(%arg0: i32) -> (i32, i32) {
    %c0_i32 = arith.constant 0 : i32
    %c0_i32_0 = arith.constant 0 : i32
    %c0_i32_1 = arith.constant 0 : i32
    return %c0_i32, %c0_i32_0 : i32, i32
  }
  func.func @transform_1(%arg0: i32) -> (i32, i32) {
    %c0_i32 = arith.constant 0 : i32
    %0 = arith.minsi %arg0, %c0_i32 : i32
    %c0_i32_0 = arith.constant 0 : i32
    %c0_i32_1 = arith.constant 0 : i32
    return %c0_i32_0, %0 : i32, i32
  }
  func.func @transform_2(%arg0: i32) -> (i32, i32, i32) {
    %c0_i32 = arith.constant 0 : i32
    %0 = arith.minsi %arg0, %c0_i32 : i32
    %c0_i32_0 = arith.constant 0 : i32
    %c0_i32_1 = arith.constant 0 : i32
    %c0_i32_2 = arith.constant 0 : i32
    return %c0_i32_0, %c0_i32_1, %0 : i32, i32, i32
  }
  func.func @transform_3(%arg0: i32) -> (i32, i32, i32) {
    %c0_i32 = arith.constant 0 : i32
    %0 = arith.minsi %arg0, %c0_i32 : i32
    %c0_i32_0 = arith.constant 0 : i32
    %c0_i32_1 = arith.constant 0 : i32
    %c0_i32_2 = arith.constant 0 : i32
    return %c0_i32_0, %c0_i32_1, %0 : i32, i32, i32
  }
  func.func @transform_4(%arg0: i32) -> (i32, i32) {
    %c1_i32 = arith.constant 1 : i32
    %0 = arith.subi %arg0, %c1_i32 : i32
    %c0_i32 = arith.constant 0 : i32
    %1 = arith.maxsi %0, %c0_i32 : i32
    %c0_i32_0 = arith.constant 0 : i32
    %c0_i32_1 = arith.constant 0 : i32
    return %c0_i32_0, %1 : i32, i32
  }
  func.func @transform_5(%arg0: i32) -> (i32, i32) {
    %c1_i32 = arith.constant 1 : i32
    %0 = arith.subi %arg0, %c1_i32 : i32
    %c0_i32 = arith.constant 0 : i32
    %1 = arith.maxsi %0, %c0_i32 : i32
    %c0_i32_0 = arith.constant 0 : i32
    %c0_i32_1 = arith.constant 0 : i32
    return %c0_i32_0, %1 : i32, i32
  }
  func.func @transform_6(%arg0: i32) -> (i32, i32) {
    %c1_i32 = arith.constant 1 : i32
    %0 = arith.subi %arg0, %c1_i32 : i32
    %c0_i32 = arith.constant 0 : i32
    %1 = arith.maxsi %0, %c0_i32 : i32
    %c0_i32_0 = arith.constant 0 : i32
    %c0_i32_1 = arith.constant 0 : i32
    return %c0_i32_0, %1 : i32, i32
  }
  func.func @transform_7(%arg0: i32) -> (i32, i32) {
    %c0_i32 = arith.constant 0 : i32
    %0 = arith.minsi %arg0, %c0_i32 : i32
    %c0_i32_0 = arith.constant 0 : i32
    %c0_i32_1 = arith.constant 0 : i32
    return %c0_i32_0, %0 : i32, i32
  }
  func.func @transform_8(%arg0: i32) -> (i32, i32) {
    %c0_i32 = arith.constant 0 : i32
    %0 = arith.minsi %arg0, %c0_i32 : i32
    %c0_i32_0 = arith.constant 0 : i32
    %c0_i32_1 = arith.constant 0 : i32
    return %c0_i32_0, %0 : i32, i32
  }
  func.func @transform_9(%arg0: i32) -> (i32, i32) {
    %c1_i32 = arith.constant 1 : i32
    %0 = arith.subi %arg0, %c1_i32 : i32
    %c0_i32 = arith.constant 0 : i32
    %1 = arith.maxsi %0, %c0_i32 : i32
    %c0_i32_0 = arith.constant 0 : i32
    %c0_i32_1 = arith.constant 0 : i32
    return %c0_i32_0, %1 : i32, i32
  }
}

</mosaic_0001>

<bundles_post_ra>
// kernel: tpu_custom_call.1
= control target key start
LH: loop header
LB: loop body
LE: loop exit
PB: predicated region body
PF: predicated region fallthrough
CT: control target
= control target key end

     0   :  { %s2813_s0 = inlined_call_operand.hbm [shape: bf16[16,128], index: 0, kind: input, shape index: {}]   ;;  %s2814_s1 = inlined_call_operand.hbm [shape: f32[16,128], index: 1, kind: input, shape index: {}]   ;;  %s2815_s2 = inlined_call_operand.hbm [shape: bf16[4,128,128], index: 2, kind: input, shape index: {}]   ;;  %s2816_s3 = inlined_call_operand.hbm [shape: f32[4,1,128], index: 3, kind: input, shape index: {}]   ;;  %s2817_s4 = inlined_call_operand.hbm [shape: s8[128,128], index: 4, kind: input, shape index: {}]   ;;  %s2818_s5 = inlined_call_operand.vmem [shape: f32[1,128], index: 5, kind: input, shape index: {}]   ;;  %s2819_s6 = inlined_call_operand.vmem [shape: f32[1,128], index: 6, kind: input, shape index: {}]   ;;  %s2820_s7 = inlined_call_operand.hbm [shape: f32[16,128], index: 7, kind: output, shape index: {0}]   ;;  %s2821_s8 = inlined_call_operand.hbm [shape: f32[16,128], index: 8, kind: output, shape index: {1}]   ;;  %s2822_s9 = inlined_call_operand.hbm [shape: f32[16,128], index: 9, kind: output, shape index: {2}]  }
   0x1   :  { %2840 = sst [smem:[#allocation28_spill]] %s2813_s0 }
   0x2   :  { %2841 = sst [smem:[#allocation29_spill]] %s2814_s1 }
   0x3   :  { %2842 = sst [smem:[#allocation30_spill]] %s2815_s2 }
   0x4   :  { %2843 = sst [smem:[#allocation31_spill]] %s2816_s3 }
   0x5   :  { %2844 = sst [smem:[#allocation32_spill]] %s2817_s4 }
   0x6   :  { %2845 = sst [smem:[#allocation33_spill]] %s2818_s5 }
   0x7   :  { %2846 = sst [smem:[#allocation34_spill]] %s2819_s6 }
   0x8   :  { %2847 = sst [smem:[#allocation35_spill]] %s2820_s7 }
   0x9   :  { %2848 = sst [smem:[#allocation36_spill]] %s2821_s8 }
   0xa   :  { %2849 = sst [smem:[#allocation37_spill]] %s2822_s9 }
   0xb   :  { %15 = vsyncpa [#allocation4], 0 }
   0xc   :  { %16 = vsyncpa [#allocation7], 0 }
   0xd   :  { %18 = vsyncpa [#allocation7 + $0x1], 0 }
   0xe   :  { %19 = vsyncpa [#allocation10], 0 }
   0xf   :  { %21 = vsyncpa [#allocation10 + $0x1], 0 }
  0x10   :  { %22 = vsyncpa [#allocation5], 0 }
  0x11   :  { %24 = vsyncpa [#allocation5 + $0x1], 0 }
  0x12   :  { %25 = vsyncpa [#allocation14], 0 }
  0x13   :  { %27 = vsyncpa [#allocation14 + $0x1], 0  ;;  %s2310_s30 = smov 0   ;;  %s2312_s10 = smov 0  }
  0x14   :  { %s2314_s11 = smov 0   ;;  %s2316_s12 = smov 0  }
  0x15   :  { %s2318_s13 = smov 0   ;;  %s2320_s14 = smov 0  }
  0x16   :  { %s2322_s15 = smov 0  }
  0x17 LB: > { %2850 = sst [smem:[#allocation23_spill]] %s2241_s13  ;;  %s2346_s16 = sadd.s32 4294967295, %s2249_s15   ;;  %s2249_s15 = sphi %s2322_s15, %s2903_s15   ;;  %s2245_s14 = sphi %s2320_s14, %s2899_s14   ;;  %s2241_s13 = sphi %s2318_s13, %s2898_s13   ;;  %s2237_s12 = sphi %s2316_s12, %s2897_s12   ;;  %s2233_s11 = sphi %s2314_s11, %s2902_s11   ;;  %s2229_s10 = sphi %s2312_s10, %s2901_s10   ;;  %s2225_s30 = sphi %s2310_s30, %s2900_s30  }
  0x18   : > { %2851 = sst [smem:[#allocation24_spill]] %s2245_s14  ;;  %s2823_s17 = sadd.s32 4294967294, %s2249_s15  }
  0x19   : > { %s2350_s18 = sadd.s32 1, %s2249_s15   ;;  %p58_p0 = scmp.lt.s32.totalorder %s2249_s15, 0 }
  0x1a   : > { %p60_p1 = scmp.lt.s32.totalorder %s2350_s18, 0  ;;  %s65_s19 = sadd.s32 1, %s2245_s14 }
  0x1b   : > { %s2356_s20 = scalar_select %p58_p0, %s2249_s15, 0 }
  0x1c   : > { %s61_s21 = scalar_select %p60_p1, %s2350_s18, 0 }
  0x1d   : > { %p72_p2 = scmp.ne.s32.totalorder %s2245_s14, %s2241_s13  ;;  %p2834_p3 = scmp.eq.s32.totalorder %s2249_s15, 0 }
  0x1e   : > { %s62_s22 = ssub.s32 %s2356_s20, %s61_s21  ;;  %p78_p4 = scmp.ne.s32.totalorder %s2241_s13, %s2237_s12 }
  0x1f   : > { %p63_p5 = scmp.eq.s32.totalorder %s62_s22, 0  ;;  %p2367_p6 = por %p2834_p3, %p72_p2 }
  0x20   : > { %p2832_p7 = scmp.eq.s32.totalorder %s2346_s16, 1  ;;  %p2374_p8 = scmp.eq.s32.totalorder %s2823_s17, 1 }
  0x21   : > { %s2379_s25 = scalar_select %p63_p5, %s2245_s14, %s65_s19  }
  0x22   : > { %p2383_p9 = por %p2832_p7, %p72_p2  ;;  %p2392_p10 = por %p2374_p8, %p78_p4 }
  0x23   : > { %2854 = sst [smem:[#allocation25_spill]] %s2379_s25  ;;  %p2831_p12 = scmp.lt.s32.totalorder %s2249_s15, 2 }
  0x24   : > { %s2855_s26 = scalar_select %p2383_p9, 1, 0 }
  0x25   : > { %s2857_s27 = scalar_select %p2392_p10, 1, 0 }
  0x26   : > { %2856 = sst [smem:[#allocation26_spill]] %s2855_s26  ;;  %s2400_s29 = sand.u32 1, %s2245_s14  }
  0x27   : > { %2858 = sst [smem:[#allocation27_spill]] %s2857_s27  ;;  %s1507_s19 = sshll.u32 %s2400_s29, 4 }
  0x28   : > { %s1508_s21 = sshll.u32 %s2356_s20, 3  ;;  %s2859_s1 = sld [smem:[#allocation29_spill]] }
  0x29   : > { %s368_s7 = scalar_lea.vmem [#allocation6], %s1507_s19  ;;  %p2411_p13 = pnand %p2831_p12, %p2367_p6 }
  0x2a   : > { %s377_s8 = sshll.u32 %s368_s7, 4  ;;  %s1511_s28 = sshll.u32 %s2400_s29, 2  ;;  %s378_s8 = int_to_ptr.vmem [resolvable:$true] %s377_s8 }
  0x2b   : > { %s2861_s14 = sand.u32 1, %s2249_s15   ;;  %p1937_p1 = pneg %p2411_p13 }
  0x2c   : > { %s2418_s26 = scalar_lea.sflag [#allocation7], %s2861_s14 }
  0x2e   : > { %s374_s25 = scalar_lea.hbm %s2859_s1, %s1508_s21 }
  0x2f   : > { %s375_s9 = sshll.u32 %s374_s25, 4  ;;  %s1940_s25 = scalar_lea.hbm %s2859_s1, 16  ;;  %s376_s9 = int_to_ptr.hbm [resolvable:$true] %s375_s9 }
  0x30   : > { %s1933_s6 = sshra.s32 %s376_s9, 4  ;;  %s1934_s6 = int_to_ptr.hbm [resolvable:$true] %s1933_s6 }
  0x31   : > { %s1935_s17 = scalar_lea.hbm %s1934_s6, 16  ;;  %p1941_p6 = scmp.lt.s32.totalorder %s1934_s6, %s2859_s1 }
  0x32   : > { %p1936_p0 = scmp.ne.s32.totalorder %s1934_s6, %s1935_s17  ;;  %p1942_p11 = scmp.lt.s32.totalorder %s1940_s25, %s1935_s17 }
  0x34   : > { %p1938_p2 = pnand %p1937_p1, %p1936_p0  ;;  %p1943_p12 = por %p1942_p11, %p1941_p6 }
  0x36   : > { %p1939_p5 = pneg %p1938_p2 }
  0x38   : > { %p1944_p7 = pnand %p1943_p12, %p1939_p5 }
  0x3a   : > { %1947 = shalt.err (!%p1944_p7)
}
  0x3b   : > { %s2835_s14 = smov 128   ;;  %s2836_s22 = smov 8  }
  0x3c   : > { %1806 = dma.hbm_to_vmem [thread:$0]  (!%p2411_p13), %s376_s9, 256, %s378_s8, %s2418_s26, %s2835_s14, %s2835_s14, %s2836_s22  }
  0x3d   : > { %s2862_s3 = sld [smem:[#allocation31_spill]]  ;;  %s414_s25 = scalar_lea.vmem [#allocation9], %s1511_s28 }
  0x3e   : > { %s422_s19 = sshll.u32 %s414_s25, 4  ;;  %s2863_s21 = sand.u32 1, %s2249_s15   ;;  %s423_s19 = int_to_ptr.vmem [resolvable:$true] %s422_s19 }
  0x3f   : > { %s2443_s1 = scalar_lea.sflag [#allocation10], %s2863_s21 }
  0x43   : > { %s419_s6 = scalar_lea.hbm %s2862_s3, %s2356_s20  ;;  %s1970_s7 = scalar_lea.hbm %s2862_s3, 4 }
  0x44   : > { %s420_s17 = sshll.u32 %s419_s6, 4  ;;  %s421_s17 = int_to_ptr.hbm [resolvable:$true] %s420_s17 }
  0x45   : > { %s1963_s5 = sshra.s32 %s421_s17, 4  ;;  %s1964_s5 = int_to_ptr.hbm [resolvable:$true] %s1963_s5 }
  0x46   : > { %s1965_s4 = scalar_lea.hbm %s1964_s5, 4  ;;  %p1971_p0 = scmp.lt.s32.totalorder %s1964_s5, %s2862_s3 }
  0x47   : > { %p1966_p7 = scmp.ne.s32.totalorder %s1964_s5, %s1965_s4  ;;  %p1972_p2 = scmp.lt.s32.totalorder %s1970_s7, %s1965_s4 }
  0x49   : > { %p1968_p11 = pnand %p1966_p7, %p1937_p1  ;;  %p1973_p5 = por %p1972_p2, %p1971_p0 }
  0x4b   : > { %p1969_p12 = pneg %p1968_p11 }
  0x4d   : > { %p1974_p6 = pnand %p1973_p5, %p1969_p12 }
  0x4f   : > { %1977 = shalt.err (!%p1974_p6)
}
  0x50   : > { %s2253_s6 = smov 16   ;;  %s2254_s25 = smov 1  }
  0x51   : > { %1812 = dma.hbm_to_vmem [thread:$0]  (!%p2411_p13), %s421_s17, 64, %s423_s19, %s2443_s1, %s2253_s6, %s2253_s6, %s2254_s25  }
  0x52   : > { %p2837_p7 = scmp.eq.s32.totalorder %s2346_s16, 0  ;;  %p170_p11 = scmp.ne.s32.totalorder %s2229_s10, %s2225_s30 }
  0x53   : > { %p1504_p12 = scmp.ge.s32.totalorder %s2249_s15, 1  ;;  %p337_p0 = scmp.lt.s32.totalorder %s2249_s15, 3 }
  0x54   : > { %p2467_p2 = por %p2837_p7, %p78_p4  ;;  %p2473_p5 = por %p170_p11, %p2837_p7 }
  0x55   : > { %p2479_p6 = por %p2374_p8, %p170_p11  ;;  %p2483_p3 = pnand %p1504_p12, %p337_p0 }
  0x56   : > { %s2868_s0 = sld [smem:[#allocation28_spill]]  ;;  %s2255_s9 = smov [#allocation3]  }
  0x57   : > { %s2866_s17 = scalar_select %p2479_p6, 1, 0 }
  0x58   : > { %p1799_p4 = pneg %p2483_p3  ;;  %s350_s7 = sshll.u32 %s2255_s9, 4  ;;  %s351_s7 = int_to_ptr.vmem [resolvable:$true] %s350_s7 }
  0x59   : > { %s1509_s24 = sshll.u32 %s2400_s29, 8  ;;  %s2256_s23 = smov 64  }
  0x5a   : > { %p1800_p8 = pnand %p1799_p4, %p2837_p7  ;;  %s2257_s28 = smov 4  }
  0x5b   : > { %s1510_s6 = sshll.u32 %s2356_s20, 2  ;;  %s391_s25 = scalar_lea.vmem [#allocation8], %s1509_s24 }
  0x5c   : > { %s348_s8 = sshll.u32 %s2868_s0, 4  ;;  %s400_s14 = sshll.u32 %s391_s25, 4  ;;  %s349_s8 = int_to_ptr.hbm [resolvable:$true] %s348_s8  ;;  %s401_s14 = int_to_ptr.vmem [resolvable:$true] %s400_s14 }
  0x5d   : > { %1802 = dma.hbm_to_vmem [thread:$0]  (!%p1800_p8), %s349_s8, 128, %s351_s7, [#allocation4], %s2256_s23, %s2256_s23, %s2257_s28  }
  0x5e   : > { %s2869_s2 = sld [smem:[#allocation30_spill]] }
  0x64   : > { %s397_s21 = scalar_lea.hbm %s2869_s2, %s1510_s6  ;;  %s2030_s20 = scalar_lea.hbm %s2869_s2, 256 }
  0x65   : > { %s398_s0 = sshll.u32 %s397_s21, 4  ;;  %s399_s0 = int_to_ptr.hbm [resolvable:$true] %s398_s0 }
  0x66   : > { %s2023_s3 = sshra.s32 %s399_s0, 4  ;;  %s2024_s3 = int_to_ptr.hbm [resolvable:$true] %s2023_s3 }
  0x67   : > { %s2025_s9 = scalar_lea.hbm %s2024_s3, 256  ;;  %p2031_p4 = scmp.lt.s32.totalorder %s2024_s3, %s2869_s2 }
  0x68   : > { %p2026_p11 = scmp.ne.s32.totalorder %s2024_s3, %s2025_s9  ;;  %p2032_p8 = scmp.lt.s32.totalorder %s2030_s20, %s2025_s9 }
  0x6a   : > { %p2028_p12 = pnand %p2026_p11, %p1937_p1  ;;  %p2033_p7 = por %p2032_p8, %p2031_p4 }
  0x6c   : > { %p2029_p0 = pneg %p2028_p12 }
  0x6e   : > { %p2034_p6 = pnand %p2033_p7, %p2029_p0 }
  0x70   : > { %2037 = shalt.err (!%p2034_p6)
}
  0x71   : > { %1809 = dma.hbm_to_vmem [thread:$0]  (!%p2411_p13), %s399_s0, 4096, %s401_s14, %s2418_s26, %s2256_s23, %s2256_s23, %s2257_s28  }
  0x72   : > { %p149_p1 = scmp.gt.s32.totalorder %s2346_s16, 0  ;;  %s1497_s3 = sadd.s32 4294967295, %s2350_s18 }
  0x73   : > { %p152_p11 = scmp.gt.s32.totalorder %s1497_s3, 0  ;;  %s157_s22 = sadd.s32 1, %s2233_s11 }
  0x74   : > { %s150_s6 = scalar_select %p149_p1, %s2346_s16, 0 }
  0x75   : > { %s2905_s3 = smov (!%p152_p11, %s1497_s3), 0  ;;  %p164_p7 = scmp.ne.s32.totalorder %s2233_s11, %s2229_s10 }
  0x76   : > { %s434_s27 = sand.u32 1, %s2233_s11   ;;  %s154_s25 = ssub.s32 %s150_s6, %s2905_s3 }
  0x77   : > { %s1512_s19 = sshll.u32 %s434_s27, 5  ;;  %p155_p6 = scmp.eq.s32.totalorder %s154_s25, 0 }
  0x78   : > { %p2870_p12 = scmp.eq.s32.totalorder %s2249_s15, 0  ;;  %p2871_p4 = scmp.eq.s32.totalorder %s2346_s16, 1 }
  0x79   : > { %s2527_s0 = scalar_select %p155_p6, %s2233_s11, %s157_s22  }
  0x7a   : > { %p166_p0 = por %p164_p7, %p2870_p12  ;;  %p2522_p8 = por %p2871_p4, %p164_p7 }
  0x7b   : > { %s1514_s26 = sshll.u32 %s150_s6, 3  ;;  %s436_s14 = scalar_lea.vmem [#allocation11], %s1512_s19 }
  0x7c   : > { %s446_s23 = sshll.u32 %s436_s14, 4  ;;  %s2873_s29 = sld [smem:[#allocation32_spill]]  ;;  %s447_s23 = int_to_ptr.vmem [resolvable:$true] %s446_s23 }
  0x7d   : > { %p2874_p13 = scmp.lt.s32.totalorder %s2249_s15, 2 }
  0x7f   : > { %p2534_p1 = pnand %p2874_p13, %p166_p0 }
  0x81   : > { %p2057_p7 = pneg %p2534_p1 }
  0x82   : > { %s443_s8 = scalar_lea.hbm %s2873_s29, %s1514_s26  ;;  %s2060_s27 = scalar_lea.hbm %s2873_s29, 32 }
  0x83   : > { %s444_s20 = sshll.u32 %s443_s8, 4  ;;  %s445_s20 = int_to_ptr.hbm [resolvable:$true] %s444_s20 }
  0x84   : > { %s2053_s24 = sshra.s32 %s445_s20, 4  ;;  %s2054_s24 = int_to_ptr.hbm [resolvable:$true] %s2053_s24 }
  0x85   : > { %s2055_s3 = scalar_lea.hbm %s2054_s24, 32  ;;  %p2061_p0 = scmp.lt.s32.totalorder %s2054_s24, %s2873_s29 }
  0x86   : > { %p2056_p11 = scmp.ne.s32.totalorder %s2054_s24, %s2055_s3  ;;  %p2062_p4 = scmp.lt.s32.totalorder %s2060_s27, %s2055_s3 }
  0x88   : > { %p2058_p6 = pnand %p2057_p7, %p2056_p11  ;;  %p2063_p13 = por %p2062_p4, %p2061_p0 }
  0x8a   : > { %p2059_p12 = pneg %p2058_p6 }
  0x8c   : > { %p2064_p10 = pnand %p2063_p13, %p2059_p12 }
  0x8e   : > { %2067 = shalt.err (!%p2064_p10)
}
  0x8f   : > { %s2876_s26 = smov 8   ;;  %s2877_s14 = smov 128  }
  0x90   : > { %1815 = dma.hbm_to_vmem [thread:$0]  (!%p2534_p1), %s445_s20, 512, %s447_s23, %s2443_s1, %s2877_s14, %s2877_s14, %s2876_s26  }
  0x91   : > { %482 = sbr.rel (%p2483_p3) target bundleno = 629 (0x275), region = 48  ;;  %p2878_p11 = scmp.eq.s32.totalorder (!%p2483_p3), %s2346_s16, 0 }
  0x96   : > { %2196 = dma.done.wait (%p2878_p11), [#allocation4], 128   ;;  %p2879_p7 = pmov %p2878_p11 }
  0x97   : > { %s2559_s28 = sand.u32 1, %s2346_s16   ;;  %s2562_s9 = sand.u32 1, %s2241_s13  }
  0x98   : > { %2198 = vsyncadd (%p2879_p7), [#allocation4], 4294967168  ;;  %s2565_s8 = sshll.u32 %s2562_s9, 4  ;;  %s490_s1 = scalar_lea.sflag [#allocation7], %s2559_s28 }
  0x99   : > { %s493_s30 = scalar_lea.vmem [#allocation6], %s2565_s8 }
  0x9a   : > { %2200 = dma.done.wait (%p2467_p2), %s490_s1, 4352  }
  0x9b   : > { %2202 = vsyncadd (%p2467_p2), %s490_s1, 4294962944  ;;  %s1518_s23 = sshll.u32 %s2562_s9, 8  ;;  %s1519_s20 = sshll.u32 %s2562_s9, 2 }
  0x9c   : > { %s2575_s7 = scalar_lea.vmem [#allocation8], %s1518_s23  ;;  %s510_s24 = scalar_lea.sflag [#allocation10], %s2559_s28 }
  0x9d   : > { %s2578_s3 = scalar_lea.vmem [#allocation9], %s1519_s20 }
  0x9e   : > { %2204 = dma.done.wait (%p2467_p2), %s510_s24, 64  }
  0x9f   : > { %2206 = vsyncadd (%p2467_p2), %s510_s24, 4294967232  ;;  %s521_s22 = sand.u32 1, %s2229_s10  }
  0xa0   : > { %s1520_s6 = sshll.u32 %s521_s22, 5 }
  0xa1   : > { %s2585_s27 = scalar_lea.vmem [#allocation11], %s1520_s6 }
  0xa2   : > { %2208 = dma.done.wait (%p2473_p5), %s510_s24, 512  }
  0xa3   : > { %2210 = vsyncadd (%p2473_p5), %s510_s24, 4294966784  ;;  %s1523_s25 = sshll.u32 %s521_s22, 4  ;;  %s2592_s19 = scalar_lea.vmem [#allocation12], %s2565_s8 }
  0xa4   : > { %s2595_s26 = scalar_lea.vmem [#allocation13], %s2565_s8  ;;  %s2597_s4 = scalar_lea.vmem [#allocation15], %s1523_s25 }
  0xa5   : > { %p1536_p3 = scmp.ge.s32.totalorder %s2346_s16, 1 }
  0xa6   : > { %s1726_s5 = sshll.u32 (!%p1536_p3), %s2346_s16, 7 }
  0xa7   : > { %633 = sbr.rel (%p1536_p3) target bundleno = 388 (0x184), region = 72  ;;  %s1111_s14 = sshra.s32 (!%p1536_p3), %s1726_s5, 7 }
  0xa8   : > { %s1727_s8 = sshll.u32 (!%p1536_p3), %s1111_s14, 2 }
  0xa9   : > { %s1114_s1 = scalar_lea.vmem (!%p1536_p3), [#allocation2], %s1727_s8 }
  0xac   : > { %v1750_v0 = vld [vmem:[%s2575_s7 + $0x38] sm:$0xff]  ;;  %v1749_v3 = vld [vmem:[%s2575_s7 + $0x30] sm:$0xff]  ;;  %v1748_v8 = vld [vmem:[%s2575_s7 + $0x28] sm:$0xff] }
  0xad   : > { %v1758_v1 = vld [vmem:[%s2575_s7 + $0x78] sm:$0xff]  ;;  %710 = vmatpush.bf16.msra.mxu0 %v1750_v0  ;;  %v1757_v4 = vld [vmem:[%s2575_s7 + $0x70] sm:$0xff]  ;;  %v1756_v9 = vld [vmem:[%s2575_s7 + $0x68] sm:$0xff] }
  0xae   : > { %v1774_v2 = vld [vmem:[%s2575_s7 + $0xf8] sm:$0xff]  ;;  %832 = vmatpush.bf16.msra.mxu1 %v1758_v1  ;;  %v1773_v6 = vld [vmem:[%s2575_s7 + $0xf0] sm:$0xff]  ;;  %v1772_v10 = vld [vmem:[%s2575_s7 + $0xe8] sm:$0xff] }
  0xaf   : > { %v1766_v5 = vld [vmem:[%s2575_s7 + $0xb8] sm:$0xff]  ;;  %1040 = vmatpush.bf16.msra.mxu3 %v1774_v2  ;;  %v1765_v7 = vld [vmem:[%s2575_s7 + $0xb0] sm:$0xff]  ;;  %v1764_v11 = vld [vmem:[%s2575_s7 + $0xa8] sm:$0xff] }
  0xb0   : > { %954 = vmatpush.bf16.msra.mxu2 %v1766_v5  ;;  %v1747_v12 = vld [vmem:[%s2575_s7 + $0x20] sm:$0xff]  ;;  %v1746_v16 = vld [vmem:[%s2575_s7 + $0x18] sm:$0xff]  ;;  %v1745_v20 = vld [vmem:[%s2575_s7 + $0x10] sm:$0xff] }
  0xb1   : > { %711 = vmatpush.bf16.msra.mxu0 %v1749_v3  ;;  %v1755_v13 = vld [vmem:[%s2575_s7 + $0x60] sm:$0xff]  ;;  %v1754_v17 = vld [vmem:[%s2575_s7 + $0x58] sm:$0xff]  ;;  %v1753_v21 = vld [vmem:[%s2575_s7 + $0x50] sm:$0xff] }
  0xb2   : > { %833 = vmatpush.bf16.msra.mxu1 %v1757_v4  ;;  %v1771_v14 = vld [vmem:[%s2575_s7 + $0xe0] sm:$0xff]  ;;  %v1770_v18 = vld [vmem:[%s2575_s7 + $0xd8] sm:$0xff]  ;;  %v1769_v22 = vld [vmem:[%s2575_s7 + $0xd0] sm:$0xff] }
  0xb3   : > { %1041 = vmatpush.bf16.msra.mxu3 %v1773_v6  ;;  %v1763_v15 = vld [vmem:[%s2575_s7 + $0xa0] sm:$0xff]  ;;  %v1762_v19 = vld [vmem:[%s2575_s7 + $0x98] sm:$0xff]  ;;  %v1761_v23 = vld [vmem:[%s2575_s7 + $0x90] sm:$0xff] }
  0xb4   : > { %955 = vmatpush.bf16.msra.mxu2 %v1765_v7  ;;  %v1744_v24 = vld [vmem:[%s2575_s7 + $0x8] sm:$0xff]  ;;  %v1743_v28 = vld [vmem:[%s2575_s7] sm:$0xff]  ;;  %v1742_v32 = vld [vmem:[#allocation3] sm:$0xff] }
  0xb5   : > { %712 = vmatpush.bf16.msra.mxu0 %v1748_v8  ;;  %v1752_v25 = vld [vmem:[%s2575_s7 + $0x48] sm:$0xff]  ;;  %v1751_v29 = vld [vmem:[%s2575_s7 + $0x40] sm:$0xff] }
  0xb6   : > { %834 = vmatpush.bf16.msra.mxu1 %v1756_v9  ;;  %v1768_v26 = vld [vmem:[%s2575_s7 + $0xc8] sm:$0xff]  ;;  %v1767_v30 = vld [vmem:[%s2575_s7 + $0xc0] sm:$0xff] }
  0xb7   : > { %1042 = vmatpush.bf16.msra.mxu3 %v1772_v10  ;;  %v1760_v27 = vld [vmem:[%s2575_s7 + $0x88] sm:$0xff]  ;;  %v1759_v31 = vld [vmem:[%s2575_s7 + $0x80] sm:$0xff] }
  0xb8   : > { %956 = vmatpush.bf16.msra.mxu2 %v1764_v11  ;;  %v1895_v33 = vld [vmem:[%s2578_s3] ss:$0 sm:$0xff]  ;;  %v1896_v34 = vld [vmem:[%s2578_s3 + $0x1] ss:$0 sm:$0xff]  ;;  %v1897_v41 = vld [vmem:[%s2578_s3 + $0x3] ss:$0 sm:$0xff] }
  0xb9   : > { %713 = vmatpush.bf16.msra.mxu0 %v1747_v12  ;;  %v1898_v51 = vld [vmem:[%s2578_s3 + $0x2] ss:$0 sm:$0xff] }
  0xba   : > { %835 = vmatpush.bf16.msra.mxu1 %v1755_v13 }
  0xbb   : > { %1043 = vmatpush.bf16.msra.mxu3 %v1771_v14 }
  0xbc   : > { %957 = vmatpush.bf16.msra.mxu2 %v1763_v15 }
  0xbd   : > { %714 = vmatpush.bf16.msra.mxu0 %v1746_v16 }
  0xbe   : > { %836 = vmatpush.bf16.msra.mxu1 %v1754_v17 }
  0xbf   : > { %1044 = vmatpush.bf16.msra.mxu3 %v1770_v18 }
  0xc0   : > { %958 = vmatpush.bf16.msra.mxu2 %v1762_v19 }
  0xc1   : > { %715 = vmatpush.bf16.msra.mxu0 %v1745_v20 }
  0xc2   : > { %837 = vmatpush.bf16.msra.mxu1 %v1753_v21 }
  0xc3   : > { %1045 = vmatpush.bf16.msra.mxu3 %v1769_v22 }
  0xc4   : > { %959 = vmatpush.bf16.msra.mxu2 %v1761_v23 }
  0xc5   : > { %716 = vmatpush.bf16.msra.mxu0 %v1744_v24 }
  0xc6   : > { %838 = vmatpush.bf16.msra.mxu1 %v1752_v25 }
  0xc7   : > { %1046 = vmatpush.bf16.msra.mxu3 %v1768_v26 }
  0xc8   : > { %960 = vmatpush.bf16.msra.mxu2 %v1760_v27 }
  0xc9   : > { %717 = vmatpush.bf16.msra.mxu0 %v1743_v28 }
  0xca   : > { %839 = vmatpush.bf16.msra.mxu1 %v1751_v29  ;;  %v1092_v29 = vld [vmem:[%s493_s30] sm:$0xff] }
  0xcb   : > { %1047 = vmatpush.bf16.msra.mxu3 %v1767_v30 }
  0xcc   : > { %961 = vmatpush.bf16.msra.mxu2 %v1759_v31  ;;  %718 = vmatmul.bf16.vlgmr.msra.gmra.mxu0 %v1742_v32 }
  0xcd   : > { %840 = vmatmul.bf16.vlgmr.msra.gmra.mxu1 %v1742_v32 }
  0xce   : > { %1048 = vmatmul.bf16.vlgmr.msra.gmra.mxu3 %v1742_v32 }
  0xcf   : > { %962 = vmatmul.bf16.vlgmr.msra.gmra.mxu2 %v1742_v32 }
 0x149   : > { %v719_v35 = vpop.f32.mrf.mxu0 }
 0x14a   : > { %v841_v36 = vpop.f32.mrf.mxu1  ;;  %v720_v37 = vadd.f32 %v1895_v33, %v719_v35 }
 0x14b   : > { %v842_v38 = vadd.f32 %v1896_v34, %v841_v36 }
 0x14c   : > { %v1573_v39 = vmul.f32 -1.442695, %v720_v37 }
 0x14d   : > { %v1624_v40 = vmul.f32 -1.442695, %v842_v38 }
 0x14e   : > { %1899 = vpow2.f32 %v1573_v39 }
 0x14f   : > { %1901 = vpow2.f32 %v1624_v40 }
 0x151   : > { %v1049_v42 = vpop.f32.mrf.mxu3  ;;  %v721_v44 = vpop.f32.mrf.mxu0 }
 0x152   : > { %v1050_v43 = vadd.f32 %v1897_v41, %v1049_v42  ;;  %v843_v45 = vpop.f32.mrf.mxu1  ;;  %v722_v46 = vadd.f32 %v1895_v33, %v721_v44  ;;  %v963_v56 = vpop.f32.mrf.mxu2 }
 0x153   : > { %v844_v47 = vadd.f32 %v1896_v34, %v843_v45  ;;  %v964_v57 = vadd.f32 %v1898_v51, %v963_v56 }
 0x154   : > { %v1724_v48 = vmul.f32 -1.442695, %v1050_v43  ;;  %v1900_v49 = vpop.eup %1899  ;;  %v1574_v50 = vmul.f32 -1.442695, %v722_v46 }
 0x155   : > { %v1902_v52 = vpop.eup %1901  ;;  %v730_v53 = vadd.f32 1.0, %v1900_v49  ;;  %v1625_v54 = vmul.f32 -1.442695, %v844_v47 }
 0x156   : > { %1903 = vpow2.f32 %v1724_v48  ;;  %v852_v55 = vadd.f32 1.0, %v1902_v52 }
 0x157   : > { %1905 = vpow2.f32 %v1574_v50  ;;  %v741_v8 = vand.u32 2147483647, %v730_v53  ;;  %v743_v9 = vand.u32 2147483648, %v730_v53  ;;  %vm737_vm3 = vweird.f32 %v730_v53 }
 0x158   : > { %1907 = vrcp.f32 %v730_v53  ;;  %v865_v11 = vand.u32 2147483648, %v852_v55  ;;  %v863_v12 = vand.u32 2147483647, %v852_v55  ;;  %vm859_vm1 = vweird.f32 %v852_v55 }
 0x159   : > { %1909 = vrcp.f32 %v852_v55  ;;  %v1051_v58 = vpop.f32.mrf.mxu3  ;;  %vm2647_vm4 = vcmp.eq.f32.partialorder %v741_v8, 8.507059e+37  ;;  %v744_v21 = vor.u32 1.1754944e-38, %v743_v9 }
 0x15a   : > { %1911 = vpow2.f32 %v1625_v54  ;;  %v1052_v59 = vadd.f32 %v1897_v41, %v1051_v58  ;;  %v965_v17 = vpop.f32.mrf.mxu2  ;;  %v866_v24 = vor.u32 1.1754944e-38, %v865_v11  ;;  %vm864_vm6 = vcmp.eq.f32.partialorder %v863_v12, 8.507059e+37 }
 0x15b   : > { %1913 = vtanh.f32 %v964_v57  ;;  %v966_v30 = vadd.f32 %v1898_v51, %v965_v17 }
 0x15c   : > { %v1904_v60 = vpop.eup %1903  ;;  %v1725_v61 = vmul.f32 -1.442695, %v1052_v59 }
 0x15d   : > { %v1906_v62 = vpop.eup %1905  ;;  %v2636_v63 = vadd.f32 1.0, %v1904_v60 }
 0x15e   : > { %v1908_v0 = vpop.eup %1907  ;;  %v2638_v1 = vadd.f32 1.0, %v1906_v62  ;;  %1915 = vpow2.f32 %v1725_v61 }
 0x15f   : > { %v1910_v2 = vpop.eup %1909  ;;  %v733_v3 = vmul.f32 %v1908_v0, %v730_v53  ;;  %1917 = vrcp.f32 %v2636_v63  ;;  %vm738_vm0 = vweird.f32 %v1908_v0  ;;  %v1073_v32 = vand.u32 2147483648, %v2636_v63 }
 0x160   : > { %v1912_v4 = vpop.eup %1911  ;;  %v855_v5 = vmul.f32 %v1910_v2, %v852_v55  ;;  %1919 = vrcp.f32 %v2638_v1  ;;  %vm860_vm2 = vweird.f32 %v1910_v2  ;;  %vm739_vm5 = vmor %vm737_vm3, %vm738_vm0  ;;  %v758_v39 = vand.u32 2147483648, %v2638_v1 }
 0x161   : > { %v734_v6 = vsub.f32 1.0, %v733_v3  ;;  %v2642_v7 = vadd.f32 1.0, %v1912_v4  ;;  %v1914_v13 = vpop.eup %1913  ;;  %vm861_vm7 = vmor %vm859_vm1, %vm860_vm2  ;;  %vm752_vm8 = vweird.f32 %v2638_v1  ;;  %v756_v44 = vand.u32 2147483647, %v2638_v1 }
 0x162   : > { %v856_v10 = vsub.f32 1.0, %v855_v5  ;;  %v759_v52 = vor.u32 1.1754944e-38, %v758_v39  ;;  %vm1067_vm13 = vweird.f32 %v2636_v63  ;;  %v1071_v55 = vand.u32 2147483647, %v2636_v63 }
 0x163   : > { %1921 = vrcp.f32 %v2642_v7  ;;  %v735_v14 = vmul.f32 %v1908_v0, %v734_v6  ;;  %v880_v46 = vand.u32 2147483648, %v2642_v7  ;;  %v878_v48 = vand.u32 2147483647, %v2642_v7 }
 0x164   : > { %v1916_v15 = vpop.eup %1915  ;;  %v857_v16 = vmul.f32 %v1910_v2, %v856_v10  ;;  %vm757_vm14 = vcmp.eq.f32.partialorder %v756_v44, 8.507059e+37  ;;  %vm874_vm0 = vweird.f32 %v2642_v7  ;;  %vm1072_vm3 = vcmp.eq.f32.partialorder %v1071_v55, 8.507059e+37 }
 0x165   : > { %v2645_v18 = vpop.eup %1917  ;;  %v736_v19 = vadd.f32 %v1908_v0, %v735_v14  ;;  %v2651_v22 = vadd.f32 1.0, %v1916_v15  ;;  %vm879_vm2 = vcmp.eq.f32.partialorder %v878_v48, 8.507059e+37 }
 0x166   : > { %v1920_v23 = vpop.eup %1919  ;;  %v1063_v25 = vmul.f32 %v2645_v18, %v2636_v63  ;;  %v858_v26 = vadd.f32 %v1910_v2, %v857_v16  ;;  %vm1068_vm10 = vweird.f32 %v2645_v18  ;;  %v881_v63 = vor.u32 1.1754944e-38, %v880_v46 }
 0x167   : > { %v748_v27 = vmul.f32 %v1920_v23, %v2638_v1  ;;  %v740_v28 = vsel %vm739_vm5, %v1908_v0, %v736_v19  ;;  %1923 = vrcp.f32 %v2651_v22  ;;  %vm753_vm9 = vweird.f32 %v1920_v23  ;;  %vm2680_vm15 = vmor %vm1067_vm13, %vm1068_vm10  ;;  %v1093_v0 = vld [vmem:[%s493_s30 + $0x8] sm:$0xff] }
 0x168   : > { %v1064_v31 = vsub.f32 1.0, %v1063_v25  ;;  %v745_v33 = vsel %vm2647_vm4, %v744_v21, %v740_v28  ;;  %v862_v34 = vsel %vm861_vm7, %v1910_v2, %v858_v26  ;;  %1925 = vtanh.f32 %v966_v30  ;;  %vm754_vm12 = vmor %vm752_vm8, %vm753_vm9 }
 0x169   : > { %v1922_v35 = vpop.eup %1921  ;;  %v749_v36 = vsub.f32 1.0, %v748_v27  ;;  %v867_v37 = vsel %vm864_vm6, %v866_v24, %v862_v34  ;;  %v1096_v38 = vmul.f32 %v1914_v13, %v745_v33  ;;  %v1074_v1 = vor.u32 1.1754944e-38, %v1073_v32 }
 0x16a   : > { %v1065_v40 = vmul.f32 %v2645_v18, %v1064_v31  ;;  %v870_v41 = vmul.f32 %v1922_v35, %v2642_v7  ;;  %v1094_v42 = vmul.f32 %v1092_v29, %v867_v37  ;;  %vm875_vm11 = vweird.f32 %v1922_v35 }
 0x16b   : > { %v750_v43 = vmul.f32 %v1920_v23, %v749_v36  ;;  %vm876_vm1 = vmor %vm874_vm0, %vm875_vm11  ;;  %v1088_v12 = vand.u32 2147483648, %v2651_v22  ;;  %vm1082_vm5 = vweird.f32 %v2651_v22  ;;  %v1086_v13 = vand.u32 2147483647, %v2651_v22 }
 0x16c   : > { %v871_v45 = vsub.f32 1.0, %v870_v41  ;;  %v1098_v47 = vadd.f32 %v1096_v38, %v1094_v42  ;;  %v1066_v50 = vadd.f32 %v2645_v18, %v1065_v40 }
 0x16d   : > { %v1924_v49 = vpop.eup %1923  ;;  %v751_v51 = vadd.f32 %v1920_v23, %v750_v43  ;;  %v1089_v15 = vor.u32 1.1754944e-38, %v1088_v12  ;;  %vm1087_vm7 = vcmp.eq.f32.partialorder %v1086_v13, 8.507059e+37 }
 0x16e   : > { %v872_v53 = vmul.f32 %v1922_v35, %v871_v45  ;;  %1927 = vtanh.f32 %v1098_v47  ;;  %1106 = vst [vmem:[%s2595_s26] sm:$0xff] %v1098_v47  ;;  %v1078_v54 = vmul.f32 %v1924_v49, %v2651_v22  ;;  %v1926_v61 = vpop.eup %1925  ;;  %v1070_v62 = vsel %vm2680_vm15, %v2645_v18, %v1066_v50 }
 0x16f   : > { %v755_v56 = vsel %vm754_vm12, %v1920_v23, %v751_v51  ;;  %v1075_v7 = vsel %vm1072_vm3, %v1074_v1, %v1070_v62  ;;  %vm1083_vm4 = vweird.f32 %v1924_v49 }
 0x170   : > { %v1079_v58 = vsub.f32 1.0, %v1078_v54  ;;  %v760_v59 = vsel %vm757_vm14, %v759_v52, %v755_v56  ;;  %v873_v60 = vadd.f32 %v1922_v35, %v872_v53  ;;  %vm1084_vm6 = vmor %vm1082_vm5, %vm1083_vm4 }
 0x171   : > { %v1097_v3 = vmul.f32 %v1926_v61, %v760_v59 }
 0x172   : > { %v877_v2 = vsel %vm876_vm1, %v1922_v35, %v873_v60  ;;  %v1080_v4 = vmul.f32 %v1924_v49, %v1079_v58 }
 0x173   : > { %v882_v5 = vsel %vm879_vm2, %v881_v63, %v877_v2 }
 0x174   : > { %v1928_v6 = vpop.eup %1927  ;;  %v1095_v8 = vmul.f32 %v1093_v0, %v882_v5  ;;  %v1081_v11 = vadd.f32 %v1924_v49, %v1080_v4 }
 0x175   : > { %v1102_v9 = vmul.f32 %v1928_v6, %v1075_v7 }
 0x176   : > { %v1099_v10 = vadd.f32 %v1097_v3, %v1095_v8  ;;  %v1085_v14 = vsel %vm1084_vm6, %v1924_v49, %v1081_v11 }
 0x177   : > { %1104 = vst [vmem:[%s2592_s19] sm:$0xff] %v1102_v9  ;;  %v1090_v17 = vsel %vm1087_vm7, %v1089_v15, %v1085_v14 }
 0x178   : > { %1929 = vtanh.f32 %v1099_v10  ;;  %1107 = vst [vmem:[%s2595_s26 + $0x8] sm:$0xff] %v1099_v10 }
 0x17e   : > { %v1930_v16 = vpop.eup %1929 }
 0x17f   : > { %v1103_v18 = vmul.f32 %v1930_v16, %v1090_v17 }
 0x181   : > { %1105 = vst [vmem:[%s2592_s19 + $0x8] sm:$0xff] %v1103_v18  ;;  %v1779_v19 = vpack.c.bf16 %v1103_v18, %v1102_v9 }
 0x183   : > { %1780 = vst [vmem:[%s1114_s1] sm:$0xff] %v1779_v19  }
 0x184 PF: > { %p1728_p10 = scmp.lt.s32.totalorder %s2346_s16, 1 }
 0x185   : > { %s2884_s20 = sld [smem:[#allocation33_spill]] (!%p1728_p10) }
 0x186   : > { %1120 = sbr.rel (%p1728_p10) target bundleno = 572 (0x23c), region = 76  ;;  %s2885_s3 = sld [smem:[#allocation34_spill]] (!%p1728_p10) }
 0x18b   : > { %v1124_v20 = vld [vmem:[%s2585_s27 + $0x18] sm:$0xff]  ;;  %v1123_v21 = vld [vmem:[%s2585_s27 + $0x10] sm:$0xff]  ;;  %v1122_v38 = vld [vmem:[%s2585_s27 + $0x8] sm:$0xff] }
 0x18c   : > { %v1139_v22 = vunpack.c.2.s8 %v1124_v20  ;;  %v1140_v23 = vunpack.c.3.s8 %v1124_v20  ;;  %v1137_v24 = vunpack.c.0.s8 %v1124_v20  ;;  %v1138_v25 = vunpack.c.1.s8 %v1124_v20  ;;  %v1121_v49 = vld [vmem:[%s2585_s27] sm:$0xff]  ;;  %v1775_v0 = vld [vmem:[#allocation2] sm:$0xff] }
 0x18d   : > { %v1135_v26 = vunpack.c.2.s8 %v1123_v21  ;;  %v1136_v27 = vunpack.c.3.s8 %v1123_v21  ;;  %v1133_v33 = vunpack.c.0.s8 %v1123_v21  ;;  %v1134_v34 = vunpack.c.1.s8 %v1123_v21  ;;  %v1931_v1 = vld [vmem:[%s2884_s20] ss:$0 sm:$0xff] }
 0x18e   : > { %v1155_v28 = vcvt.s32.f32 %v1139_v22  ;;  %v1156_v29 = vcvt.s32.f32 %v1140_v23  ;;  %v1153_v30 = vcvt.s32.f32 %v1137_v24  ;;  %v1154_v31 = vcvt.s32.f32 %v1138_v25  ;;  %v1932_v2 = vld [vmem:[%s2885_s3] ss:$0 sm:$0xff] }
 0x18f   : > { %v1151_v36 = vcvt.s32.f32 %v1135_v26  ;;  %v1152_v37 = vcvt.s32.f32 %v1136_v27  ;;  %v1149_v39 = vcvt.s32.f32 %v1133_v33  ;;  %v1150_v40 = vcvt.s32.f32 %v1134_v34 }
 0x190   : > { %v1164_v32 = vpack.c.bf16 %v1156_v29, %v1155_v28  ;;  %v1163_v35 = vpack.c.bf16 %v1154_v31, %v1153_v30  ;;  %v1131_v42 = vunpack.c.2.s8 %v1122_v38  ;;  %v1132_v43 = vunpack.c.3.s8 %v1122_v38 }
 0x191   : > { %v1162_v41 = vpack.c.bf16 %v1152_v37, %v1151_v36  ;;  %v1161_v44 = vpack.c.bf16 %v1150_v40, %v1149_v39  ;;  %v1129_v47 = vunpack.c.0.s8 %v1122_v38  ;;  %v1130_v48 = vunpack.c.1.s8 %v1122_v38 }
 0x192   : > { %1173 = vmatpush.bf16.msra.mxu0 %v1164_v32  ;;  %v1147_v45 = vcvt.s32.f32 %v1131_v42  ;;  %v1148_v46 = vcvt.s32.f32 %v1132_v43  ;;  %v1127_v50 = vunpack.c.2.s8 %v1121_v49  ;;  %v1128_v54 = vunpack.c.3.s8 %v1121_v49 }
 0x193   : > { %v1145_v52 = vcvt.s32.f32 %v1129_v47  ;;  %v1146_v53 = vcvt.s32.f32 %v1130_v48  ;;  %v1125_v55 = vunpack.c.0.s8 %v1121_v49  ;;  %v1126_v59 = vunpack.c.1.s8 %v1121_v49 }
 0x194   : > { %v1160_v51 = vpack.c.bf16 %v1148_v46, %v1147_v45  ;;  %v1143_v57 = vcvt.s32.f32 %v1127_v50  ;;  %v1144_v58 = vcvt.s32.f32 %v1128_v54 }
 0x195   : > { %v1159_v56 = vpack.c.bf16 %v1146_v53, %v1145_v52  ;;  %v1141_v61 = vcvt.s32.f32 %v1125_v55  ;;  %v1142_v62 = vcvt.s32.f32 %v1126_v59 }
 0x196   : > { %1174 = vmatpush.bf16.msra.mxu0 %v1163_v35  ;;  %v1158_v60 = vpack.c.bf16 %v1144_v58, %v1143_v57 }
 0x197   : > { %v1157_v63 = vpack.c.bf16 %v1142_v62, %v1141_v61 }
 0x19a   : > { %1175 = vmatpush.bf16.msra.mxu0 %v1162_v41 }
 0x19e   : > { %1176 = vmatpush.bf16.msra.mxu0 %v1161_v44 }
 0x1a2   : > { %1177 = vmatpush.bf16.msra.mxu0 %v1160_v51 }
 0x1a6   : > { %1178 = vmatpush.bf16.msra.mxu0 %v1159_v56 }
 0x1aa   : > { %1179 = vmatpush.bf16.msra.mxu0 %v1158_v60 }
 0x1ae   : > { %1180 = vmatpush.bf16.msra.mxu0 %v1157_v63 }
 0x1b1   : > { %1181 = vmatmul.bf16.vlgmr.msra.gmra.mxu0 %v1775_v0 }
 0x22e   : > { %v1182_v3 = vpop.f32.mrf.mxu0 }
 0x22f   : > { %v1191_v4 = vmul.f32 %v1931_v1, %v1182_v3 }
 0x231   : > { %v1197_v5 = vadd.f32 %v1932_v2, %v1191_v4 }
 0x233   : > { %1199 = vst [vmem:[%s2597_s4] sm:$0xff] %v1197_v5 }
 0x236   : > { %v1184_v6 = vpop.f32.mrf.mxu0 }
 0x237   : > { %v1192_v7 = vmul.f32 %v1931_v1, %v1184_v6 }
 0x239   : > { %v1198_v8 = vadd.f32 %v1932_v2, %v1192_v7 }
 0x23b   : > { %1200 = vst [vmem:[%s2597_s4 + $0x8] sm:$0xff] %v1198_v8 }
 0x23c PF: > { %p1219_p2 = scmp.lt.s32.totalorder %s2346_s16, 0  ;;  %s1243_s27 = sshll.u32 %s2595_s26, 4  ;;  %s1244_s27 = int_to_ptr.vmem [resolvable:$true] %s1243_s27 }
 0x23d   : > { %s2887_s8 = sld [smem:[#allocation36_spill]]  ;;  %s1225_s3 = sshll.u32 %s2592_s19, 4  ;;  %s2721_s3 = int_to_ptr.vmem [resolvable:$true] %s1225_s3 }
 0x23e   : > { %s1220_s6 = scalar_select %p1219_p2, %s2346_s16, 0 }
 0x23f   : > { %s2888_s20 = sld [smem:[#allocation35_spill]]  ;;  %s1207_s2 = scalar_lea.sflag [#allocation14], %s2559_s28 }
 0x240   : > { %s1736_s25 = sshll.u32 %s1220_s6, 3 }
 0x243   : > { %s1242_s1 = scalar_lea.hbm %s2887_s8, %s1736_s25  ;;  %s2103_s5 = scalar_lea.hbm %s2887_s8, 16 }
 0x244   : > { %s1245_s24 = sshll.u32 %s1242_s1, 4  ;;  %s1246_s24 = int_to_ptr.hbm [resolvable:$true] %s1245_s24 }
 0x245   : > { %s1224_s7 = scalar_lea.hbm %s2888_s20, %s1736_s25  ;;  %s2097_s29 = sshra.s32 %s1246_s24, 4  ;;  %s2098_s29 = int_to_ptr.hbm [resolvable:$true] %s2097_s29 }
 0x246   : > { %s2099_s13 = scalar_lea.hbm %s2098_s29, 16  ;;  %p2104_p12 = scmp.lt.s32.totalorder %s2098_s29, %s2887_s8 }
 0x247   : > { %p2100_p5 = scmp.ne.s32.totalorder %s2098_s29, %s2099_s13  ;;  %p2105_p0 = scmp.lt.s32.totalorder %s2103_s5, %s2099_s13 }
 0x249   : > { %p2101_p1 = pnand %p2100_p5, %p2383_p9  ;;  %p2106_p4 = por %p2105_p0, %p2104_p12 }
 0x24b   : > { %p2102_p6 = pneg %p2101_p1 }
 0x24d   : > { %p2107_p13 = pnand %p2106_p4, %p2102_p6 }
 0x24f   : > { %2110 = shalt.err (!%p2107_p13)
}
 0x250   : > { %s2258_s19 = smov 128   ;;  %s2259_s25 = smov 8  }
 0x251   : > { %1794 = dma.vmem_to_hbm [thread:$0]  (%p2383_p9), %s1244_s27, 256, %s1246_s24, %s1207_s2, %s2258_s19, %s2258_s19, %s2259_s25  }
 0x252   : > { %s1227_s1 = sshll.u32 %s1224_s7, 4  ;;  %s1738_s23 = sadd.s32 4294967295, %s2346_s16  ;;  %s1228_s1 = int_to_ptr.hbm [resolvable:$true] %s1227_s1 }
 0x253   : > { %p2740_p11 = scmp.gt.s32.totalorder %s1738_s23, 0  ;;  %s1202_s29 = scalar_lea.sflag [#allocation5], %s2562_s9 }
 0x254   : > { %s2125_s26 = sshra.s32 %s1228_s1, 4  ;;  %s2131_s30 = scalar_lea.hbm %s2888_s20, 16  ;;  %s2126_s26 = int_to_ptr.hbm [resolvable:$true] %s2125_s26 }
 0x255   : > { %s2127_s6 = scalar_lea.hbm %s2126_s26, 16  ;;  %p2132_p2 = scmp.lt.s32.totalorder %s2126_s26, %s2888_s20 }
 0x256   : > { %p2128_p7 = scmp.ne.s32.totalorder %s2126_s26, %s2127_s6  ;;  %p2133_p5 = scmp.lt.s32.totalorder %s2131_s30, %s2127_s6 }
 0x258   : > { %p2129_p3 = pnand %p2128_p7, %p2383_p9  ;;  %p2134_p1 = por %p2133_p5, %p2132_p2 }
 0x25a   : > { %p2130_p10 = pneg %p2129_p3 }
 0x25c   : > { %p2135_p6 = pnand %p2134_p1, %p2130_p10 }
 0x25e   : > { %2138 = shalt.err (!%p2135_p6)
}
 0x25f   : > { %1793 = dma.vmem_to_hbm [thread:$0]  (%p2383_p9), %s2721_s3, 256, %s1228_s1, %s1202_s29, %s2258_s19, %s2258_s19, %s2259_s25  }
 0x260   : > { %s2907_s23 = smov (!%p2740_p11, %s1738_s23), 0  ;;  %s1262_s16 = sshll.u32 %s2597_s4, 4  ;;  %s1263_s16 = int_to_ptr.vmem [resolvable:$true] %s1262_s16 }
 0x261   : > { %s1739_s9 = sshll.u32 %s2907_s23, 3  ;;  %s2890_s6 = sld [smem:[#allocation37_spill]] }
 0x267   : > { %s1261_s5 = scalar_lea.hbm %s2890_s6, %s1739_s9  ;;  %s2159_s1 = scalar_lea.hbm %s2890_s6, 16 }
 0x268   : > { %s1264_s14 = sshll.u32 %s1261_s5, 4  ;;  %s1265_s14 = int_to_ptr.hbm [resolvable:$true] %s1264_s14 }
 0x269   : > { %s2153_s22 = sshra.s32 %s1265_s14, 4  ;;  %s2154_s22 = int_to_ptr.hbm [resolvable:$true] %s2153_s22 }
 0x26a   : > { %s2155_s30 = scalar_lea.hbm %s2154_s22, 16  ;;  %p2160_p9 = scmp.lt.s32.totalorder %s2154_s22, %s2890_s6 }
 0x26b   : > { %p2156_p12 = scmp.ne.s32.totalorder %s2154_s22, %s2155_s30  ;;  %p2161_p13 = scmp.lt.s32.totalorder %s2159_s1, %s2155_s30 }
 0x26d   : > { %p2157_p0 = pnand %p2156_p12, %p2522_p8  ;;  %p2162_p11 = por %p2161_p13, %p2160_p9 }
 0x26f   : > { %p2158_p4 = pneg %p2157_p0 }
 0x271   : > { %p2163_p7 = pnand %p2162_p11, %p2158_p4 }
 0x273   : > { %2166 = shalt.err (!%p2163_p7)
}
 0x274   : > { %1795 = dma.vmem_to_hbm [thread:$0]  (%p2522_p8), %s1263_s16, 256, %s1265_s14, %s1207_s2, %s2258_s19, %s2258_s19, %s2259_s25  }
 0x275 PF: > { %s2891_s13 = sld [smem:[#allocation27_spill]]  ;;  %s1279_s29 = sand.u32 1, %s2237_s12  }
 0x276   : > { %p2893_p10 = scmp.ge.s32.totalorder %s2249_s15, 2  ;;  %s1280_s7 = scalar_lea.sflag [#allocation5], %s1279_s29 }
 0x27b   : > { %p2892_p3 = scmp.ne.s32.totalorder %s2891_s13, 0 }
 0x27d   : > { %p1817_p2 = pnand %p2893_p10, %p2892_p3 }
 0x27f   : > { %p1818_p5 = pneg %p1817_p2 }
 0x281   : > { %2212 = dma.done.wait (%p1818_p5), %s1280_s7, 256  }
 0x282   : > { %2214 = vsyncadd (%p1818_p5), %s1280_s7, 4294967040  ;;  %s2894_s21 = sadd.s32 4294967294, %s2249_s15  }
 0x283   : > { %s1289_s9 = sand.u32 1, %s2894_s21  }
 0x284   : > { %s1290_s24 = scalar_lea.sflag [#allocation14], %s1289_s9 }
 0x285   : > { %2216 = dma.done.wait (%p1818_p5), %s1290_s24, 256  }
 0x286   : > { %2218 = vsyncadd (%p1818_p5), %s1290_s24, 4294967040  ;;  %p2895_p8 = scmp.ne.s32.totalorder %s2866_s17, 0  ;;  %p2896_p1 = pmov %p2893_p10 }
 0x288   : > { %p1823_p6 = pnand %p2896_p1, %p2895_p8 }
 0x28a   : > { %p1824_p12 = pneg %p1823_p6 }
 0x28c   : > { %2220 = dma.done.wait (%p1824_p12), %s1290_s24, 256  }
 0x28d   : > { %2222 = vsyncadd (%p1824_p12), %s1290_s24, 4294967040  ;;  %s2897_s12 = sld [smem:[#allocation23_spill]]  ;;  %p30_p0 = scmp.ge.s32.totalorder %s2350_s18, 4  }
 0x28e   : > { %s2898_s13 = sld [smem:[#allocation24_spill]]  ;;  %s2900_s30 = smov %s2229_s10 }
 0x28f   : > { %s2899_s14 = sld [smem:[#allocation25_spill]]  ;;  %s2901_s10 = smov %s2233_s11 }
 0x290   : > { %s2902_s11 = smov %s2527_s0  ;;  %s2903_s15 = smov %s2350_s18 }
 0x291   :  { %32 = sbr.rel (!%p30_p0) target bundleno = 23 (0x17), region = 186 }
 0x296   :  { %1306 = vsyncpa [#allocation4], 1 }
 0x297   :  { %1308 = vsyncpa [#allocation4 + $0x1], 1 }
 0x298   :  { %1309 = vsyncpa [#allocation7], 1 }
 0x299   :  { %1311 = vsyncpa [#allocation7 + $0x1], 1 }
 0x29a   :  { %1312 = vsyncpa [#allocation10], 1 }
 0x29b   :  { %1314 = vsyncpa [#allocation10 + $0x1], 1 }
 0x29c   :  { %1315 = vsyncpa [#allocation5], 1 }
 0x29d   :  { %1317 = vsyncpa [#allocation5 + $0x1], 1 }
 0x29e   :  { %1318 = vsyncpa [#allocation14], 1 }
 0x29f   :  { %1320 = vsyncpa [#allocation14 + $0x1], 1 }

</bundles_post_ra>
